<compile_context>
chip_gen: v7x
topology: tpu7x:2x2x1
jax: 0.10.0
libtpu: 0.0.40
codegen_flags: <defaults>
</compile_context>

<pallas_src>
import numpy as np
import jax
import jax.numpy as jnp
from jax.experimental import pallas as pl
from jax.experimental.pallas import tpu as pltpu


def _cdiv(a, b):
    return -(-a // b)


def _round_up(a, b):
    return _cdiv(a, b) * b


def _make_kernel(shifts, hp, tt, has_halo, dot_kwargs):
    """Kernel body with static conv geometry (shifts are distinct tap shifts, hp >= max shift)."""

    def body(window, w_ref, b_ref, o_ref):
        # im2col slab: one lane-concat of the (statically) shifted views, then ONE MXU matmul
        if len(shifts) == 1:
            s = shifts[0]
            slab = window[hp - s: hp - s + tt, :]
        else:
            slab = jnp.concatenate(
                [window[hp - s: hp - s + tt, :] for s in shifts], axis=-1)
        acc = jnp.dot(slab, w_ref[...], **dot_kwargs)          # (tt, stride*c_out) f32
        o_ref[0] = (acc + b_ref[...]).astype(o_ref.dtype)      # single hoisted bias add

    if has_halo:
        def kernel(x_ref, h_ref, w_ref, b_ref, o_ref):
            j = pl.program_id(1)
            halo_rows = h_ref[0]                                 # (hp, c_in) prev-tile tail
            halo_rows = jnp.where(j > 0, halo_rows, jnp.zeros_like(halo_rows))
            window = jnp.concatenate([halo_rows, x_ref[0]], axis=0)   # (hp+tt, c_in)
            body(window, w_ref, b_ref, o_ref)
    else:
        def kernel(x_ref, w_ref, b_ref, o_ref):
            body(x_ref[0], w_ref, b_ref, o_ref)

    return kernel


def trans_conv_net_ntc(x_ntc, weight, bias, *, kernel_size, stride=1, dilation=1,
                       tile_t=512, compute_dtype=jnp.bfloat16, out_dtype=None,
                       precision=None):
    """TransConvNet.forward in channels-last layout.

    x_ntc:  (N, T, C_in)
    weight: (K, C_in, C_out)   (= torch ConvTranspose1d weight (C_in, C_out, K), k-major)
    bias:   (C_out,)
    returns (N, out_len, C_out) in out_dtype (default: compute_dtype).
    """
    N, T, c_in = x_ntc.shape
    K = int(kernel_size)
    c_out = weight.shape[-1]
    assert weight.shape == (K, c_in, c_out) and bias.shape == (c_out,)

    pad = K - stride                                       # unpad1d((0, kernel_size - stride))
    assert pad >= 0, "TransConvNet assumes kernel_size >= stride"
    full_len = (T - 1) * stride + dilation * (K - 1) + 1   # raw ConvTranspose1d output length
    out_len = full_len - pad                               # after causal unpad

    if out_dtype is None:
        out_dtype = compute_dtype
    if precision is None and np.dtype(compute_dtype) == np.dtype(np.float32):
        precision = jax.lax.Precision.HIGH                 # bf16x3: ~f32 accuracy, not 6 passes

    # Polyphase geometry: output row t = i*stride + r needs x[i - shift_k] @ W[k]
    # for taps k with (k*dil) % stride == r, shift_k = (k*dil)//stride.
    shifts = sorted({(k * dilation) // stride for k in range(K)})
    n_shifts = len(shifts)
    halo = shifts[-1]
    hp = _round_up(halo, 8) if halo > 0 else 0             # sublane-aligned halo rows
    unit = max(hp, 8)                                      # tt must be a multiple of hp and 8

    rows_needed = _cdiv(out_len, stride)                   # per-phase output rows

    in_bytes = np.dtype(compute_dtype).itemsize
    o_bytes = np.dtype(out_dtype).itemsize
    w_bytes = n_shifts * c_in * stride * c_out * in_bytes
    b_bytes = stride * c_out * 4

    tt = max(min(int(tile_t), _round_up(rows_needed, unit)), unit)
    tt = _round_up(tt, unit)

    def footprint(t):   # double-buffered blocks + weights/bias
        return (2 * (t * c_in * in_bytes + hp * c_in * in_bytes
                     + t * stride * c_out * o_bytes)
                + 2 * (w_bytes + b_bytes))

    VMEM_BUDGET = 40 << 20                                  # leaves headroom on v7x (64 MiB TC)
    while footprint(tt) > VMEM_BUDGET and tt > unit:
        tt = max(_round_up(tt // 2, unit), unit)

    n_tiles = _cdiv(rows_needed, tt)
    t_pad = n_tiles * tt                                    # padded per-phase row count (>= T)
    vmem_limit = int(min(max(footprint(tt) + (8 << 20), 32 << 20), 100 << 20))

    # Cast in the wrapper so the HBM->VMEM DMA moves compute_dtype (2-byte) elements.
    x = x_ntc.astype(compute_dtype)
    if t_pad > T:
        x = jnp.pad(x, ((0, 0), (0, t_pad - T), (0, 0)))

    # Fused weight: W_fused[shift_idx, :, phase, :] = W[k] for k*dil = shift*stride + phase.
    pos = {s: i for i, s in enumerate(shifts)}
    w_f = jnp.zeros((n_shifts, c_in, stride, c_out), jnp.float32)
    for k in range(K):
        r = (k * dilation) % stride
        s = (k * dilation) // stride
        w_f = w_f.at[pos[s], :, r, :].set(weight[k].astype(jnp.float32))
    w_f = w_f.reshape(n_shifts * c_in, stride * c_out).astype(compute_dtype)
    b_f = jnp.tile(bias.astype(jnp.float32).reshape(1, 1, c_out),
                   (1, stride, 1)).reshape(1, stride * c_out)

    dot_kwargs = dict(preferred_element_type=jnp.float32)
    if precision is not None:
        dot_kwargs["precision"] = precision

    kernel = _make_kernel(shifts, hp, tt, hp > 0, dot_kwargs)

    in_arrays = [x]
    in_specs = [pl.BlockSpec((1, tt, c_in), lambda n, j: (n, j, 0))]
    if hp > 0:
        # Tiny hp-row halo block = tail of the previous tile (same array, own BlockSpec).
        # Clamped to block 0 on the first tile; the kernel zeroes it with jnp.where.
        bpt = tt // hp
        in_arrays.append(x)
        in_specs.append(pl.BlockSpec(
            (1, hp, c_in), lambda n, j: (n, jnp.maximum(j * bpt - 1, 0), 0)))
    in_arrays += [w_f, b_f]
    in_specs += [
        # constant block index -> fetched once, not per grid step
        pl.BlockSpec((n_shifts * c_in, stride * c_out), lambda n, j: (0, 0)),
        pl.BlockSpec((1, stride * c_out), lambda n, j: (0, 0)),
    ]

    out = pl.pallas_call(
        kernel,
        out_shape=jax.ShapeDtypeStruct((N, t_pad, stride * c_out), out_dtype),
        grid_spec=pltpu.PrefetchScalarGridSpec(
            num_scalar_prefetch=0,
            grid=(N, n_tiles),
            in_specs=in_specs,
            out_specs=pl.BlockSpec((1, tt, stride * c_out), lambda n, j: (n, j, 0)),
        ),
        compiler_params=pltpu.CompilerParams(
            dimension_semantics=("parallel", "parallel"),   # time stays parallel (v7x, N==1)
            vmem_limit_bytes=vmem_limit,
        ),
    )(*in_arrays)

    # (N, Tq, stride*C_out) -> (N, Tq*stride, C_out): pure row-major metadata reshape that
    # interleaves the phases, then trim to the causal length.
    return out.reshape(N, t_pad * stride, c_out)[:, :out_len, :]


def trans_conv_net(x_nct, weight, bias, **kwargs):
    """PyTorch-layout entry point: (N, C_in, T) -> (N, C_out, out_len).

    TODO(synk): keep the surrounding model in (N, T, C) so these two transposes (each a full
    extra HBM pass in XLA) disappear end-to-end; use trans_conv_net_ntc directly.
    """
    y_ntc = trans_conv_net_ntc(jnp.transpose(x_nct, (0, 2, 1)), weight, bias, **kwargs)
    return jnp.transpose(y_ntc, (0, 2, 1))


def trans_conv_net_ref(x_nct, weight, bias, *, kernel_size, stride=1, dilation=1):
    """Pure-JAX f32 reference mirroring torch ConvTranspose1d (padding=0) + causal unpad1d."""
    N, c_in, T = x_nct.shape
    K = int(kernel_size)
    c_out = weight.shape[-1]
    full_len = (T - 1) * stride + dilation * (K - 1) + 1
    x_ntc = jnp.transpose(x_nct, (0, 2, 1)).astype(jnp.float32)
    y = jnp.zeros((N, full_len, c_out), jnp.float32) + bias.astype(jnp.float32)
    for k in range(K):
        contrib = jnp.einsum("ntc,cd->ntd", x_ntc, weight[k].astype(jnp.float32))
        start = k * dilation
        y = y.at[:, start: start + (T - 1) * stride + 1: stride, :].add(contrib)
    out_len = full_len - (K - stride)
    return jnp.transpose(y[:, :out_len, :], (0, 2, 1))


if __name__ == "__main__":
    key = jax.random.PRNGKey(0)
    k1, k2, k3, k4, k5, k6 = jax.random.split(key, 6)

    # ---- Config A: upsampling transposed conv (kernel=4, stride=2), bf16 MXU + bf16 out ----
    N, c_in, c_out, K, s, d, T = 2, 8, 16, 4, 2, 1, 16
    x = jax.random.normal(k1, (N, c_in, T), jnp.float32)
    w = jax.random.normal(k2, (K, c_in, c_out), jnp.float32) * 0.2
    b = jax.random.normal(k3, (c_out,), jnp.float32) * 0.1

    out = trans_conv_net(x, w, b, kernel_size=K, stride=s, dilation=d,
                         compute_dtype=jnp.bfloat16)
    out = jax.block_until_ready(out)
    ref = trans_conv_net_ref(x, w, b, kernel_size=K, stride=s, dilation=d)
    assert out.shape == (N, c_out, T * s), out.shape
    # tolerance sized for bf16 inputs/weights/output (f32 accumulation)
    np.testing.assert_allclose(np.asarray(out, dtype=np.float32), np.asarray(ref),
                               atol=5e-2, rtol=5e-2)

    # ---- Config B: stride-1 dilated transposed conv, f32 compute + f32 output ----
    N2, ci2, co2, K2, s2, d2, T2 = 1, 8, 8, 5, 1, 2, 16
    x2 = jax.random.normal(k4, (N2, ci2, T2), jnp.float32)
    w2 = jax.random.normal(k5, (K2, ci2, co2), jnp.float32) * 0.2
    b2 = jax.random.normal(k6, (co2,), jnp.float32) * 0.1

    out2 = trans_conv_net(x2, w2, b2, kernel_size=K2, stride=s2, dilation=d2,
                          compute_dtype=jnp.float32, out_dtype=jnp.float32)
    out2 = jax.block_until_ready(out2)
    ref2 = trans_conv_net_ref(x2, w2, b2, kernel_size=K2, stride=s2, dilation=d2)
    assert out2.shape == (N2, co2, T2 * s2 + (d2 - 1) * (K2 - 1)), out2.shape
    np.testing.assert_allclose(np.asarray(out2), np.asarray(ref2), atol=2e-2, rtol=2e-2)

    print("KERNEL_OK")
</pallas_src>

<mosaic_0001>
module attributes {stable_mosaic.version = 11 : i64} {
  func.func @kernel(%arg0: i32, %arg1: i32, %arg2: memref<1x16x8xbf16, #tpu.memory_space<vmem>>, %arg3: memref<1x8x8xbf16, #tpu.memory_space<vmem>>, %arg4: memref<16x32xbf16, #tpu.memory_space<vmem>>, %arg5: memref<1x32xf32, #tpu.memory_space<vmem>>, %arg6: memref<1x16x32xbf16, #tpu.memory_space<vmem>>) attributes {dimension_semantics = [#tpu.dimension_semantics<parallel>, #tpu.dimension_semantics<parallel>], iteration_bounds = array<i64: 2, 1>, scalar_prefetch = 0 : i64, scratch_operands = 0 : i64, tpu.core_type = #tpu.core_type<tc>, window_params = [{transform_indices = @transform_0, window_bounds = array<i64: 1, 16, 8>}, {transform_indices = @transform_1, window_bounds = array<i64: 1, 8, 8>}, {pipeline_mode = #tpu.pipeline_mode<synchronous>, transform_indices = @transform_2, window_bounds = array<i64: 16, 32>}, {pipeline_mode = #tpu.pipeline_mode<synchronous>, transform_indices = @transform_3, window_bounds = array<i64: 1, 32>}, {transform_indices = @transform_4, window_bounds = array<i64: 1, 16, 32>}]} {
    %c0 = arith.constant 0 : index
    %c0_0 = arith.constant 0 : index
    %c0_1 = arith.constant 0 : index
    %0 = vector.load %arg3[%c0, %c0_0, %c0_1] : memref<1x8x8xbf16, #tpu.memory_space<vmem>>, vector<1x8x8xbf16>
    %1 = vector.shape_cast %0 : vector<1x8x8xbf16> to vector<8x8xbf16>
    %c0_i32 = arith.constant 0 : i32
    %2 = arith.cmpi sgt, %arg1, %c0_i32 : i32
    %cst = arith.constant 0.000000e+00 : bf16
    %3 = vector.broadcast %cst : bf16 to vector<8x8xbf16>
    %4 = arith.select %2, %1, %3 : vector<8x8xbf16>
    %c0_2 = arith.constant 0 : index
    %c0_3 = arith.constant 0 : index
    %c0_4 = arith.constant 0 : index
    %5 = vector.load %arg2[%c0_2, %c0_3, %c0_4] : memref<1x16x8xbf16, #tpu.memory_space<vmem>>, vector<1x16x8xbf16>
    %6 = vector.shape_cast %5 : vector<1x16x8xbf16> to vector<16x8xbf16>
    %7 = tpu.concatenate %4, %6 in 0 : vector<8x8xbf16>, vector<16x8xbf16> -> vector<24x8xbf16>
    %8 = vector.extract_strided_slice %7 {offsets = [8, 0], sizes = [16, 8], strides = [1, 1]} : vector<24x8xbf16> to vector<16x8xbf16>
    %9 = vector.extract_strided_slice %7 {offsets = [7, 0], sizes = [16, 8], strides = [1, 1]} : vector<24x8xbf16> to vector<16x8xbf16>
    %10 = tpu.concatenate %8, %9 in 1 : vector<16x8xbf16>, vector<16x8xbf16> -> vector<16x16xbf16>
    %c0_5 = arith.constant 0 : index
    %c0_6 = arith.constant 0 : index
    %11 = vector.load %arg4[%c0_5, %c0_6] : memref<16x32xbf16, #tpu.memory_space<vmem>>, vector<16x32xbf16>
    %cst_7 = arith.constant dense<0.000000e+00> : vector<16x32xf32>
    %12 = tpu.matmul %10, %11, %cst_7 {dimension_numbers = #tpu.dot_dimension_numbers<[1], [0], [0], [1], [0, 0, 1, 1], [], []>} : vector<16x16xbf16>, vector<16x32xbf16>, vector<16x32xf32> -> vector<16x32xf32>
    %c0_8 = arith.constant 0 : index
    %c0_9 = arith.constant 0 : index
    %13 = vector.load %arg5[%c0_8, %c0_9] : memref<1x32xf32, #tpu.memory_space<vmem>>, vector<1x32xf32>
    %14 = vector.broadcast %13 : vector<1x32xf32> to vector<16x32xf32>
    %15 = arith.addf %12, %14 : vector<16x32xf32>
    %16 = arith.truncf %15 : vector<16x32xf32> to vector<16x32xbf16>
    %c0_10 = arith.constant 0 : index
    %c0_11 = arith.constant 0 : index
    %c0_12 = arith.constant 0 : index
    %17 = vector.load %arg6[%c0_10, %c0_11, %c0_12] : memref<1x16x32xbf16, #tpu.memory_space<vmem>>, vector<1x16x32xbf16>
    %18 = vector.shape_cast %17 : vector<1x16x32xbf16> to vector<16x32xbf16>
    %19 = vector.shape_cast %16 : vector<16x32xbf16> to vector<1x16x32xbf16>
    tpu.vector_store %arg6[%c0_10, %c0_11, %c0_12], %19 {strides = array<i32>} : memref<1x16x32xbf16, #tpu.memory_space<vmem>>, vector<1x16x32xbf16>,
    return
  }
  func.func @transform_0(%arg0: i32, %arg1: i32) -> (i32, i32, i32) {
    %c0_i32 = arith.constant 0 : i32
    %c0_i32_0 = arith.constant 0 : i32
    return %arg0, %arg1, %c0_i32 : i32, i32, i32
  }
  func.func @transform_1(%arg0: i32, %arg1: i32) -> (i32, i32, i32) {
    %c2_i32 = arith.constant 2 : i32
    %0 = arith.muli %arg1, %c2_i32 : i32
    %c1_i32 = arith.constant 1 : i32
    %1 = arith.subi %0, %c1_i32 : i32
    %c0_i32 = arith.constant 0 : i32
    %2 = arith.maxsi %1, %c0_i32 : i32
    %c0_i32_0 = arith.constant 0 : i32
    %c0_i32_1 = arith.constant 0 : i32
    return %arg0, %2, %c0_i32_0 : i32, i32, i32
  }
  func.func @transform_2(%arg0: i32, %arg1: i32) -> (i32, i32) {
    %c0_i32 = arith.constant 0 : i32
    %c0_i32_0 = arith.constant 0 : i32
    %c0_i32_1 = arith.constant 0 : i32
    return %c0_i32, %c0_i32_0 : i32, i32
  }
  func.func @transform_3(%arg0: i32, %arg1: i32) -> (i32, i32) {
    %c0_i32 = arith.constant 0 : i32
    %c0_i32_0 = arith.constant 0 : i32
    %c0_i32_1 = arith.constant 0 : i32
    return %c0_i32, %c0_i32_0 : i32, i32
  }
  func.func @transform_4(%arg0: i32, %arg1: i32) -> (i32, i32, i32) {
    %c0_i32 = arith.constant 0 : i32
    %c0_i32_0 = arith.constant 0 : i32
    return %arg0, %arg1, %c0_i32 : i32, i32, i32
  }
}

</mosaic_0001>

<bundles_post_ra>
// kernel: tpu_custom_call.1
= control target key start
LH: loop header
LB: loop body
LE: loop exit
PB: predicated region body
PF: predicated region fallthrough
CT: control target
= control target key end

     0   :  { %9 = vsyncpa [#allocation3], 0  ;;  %s851_s0 = inlined_call_operand.vmem [shape: bf16[2,16,8], index: 0, kind: input, shape index: {}]   ;;  %s852_s1 = inlined_call_operand.vmem [shape: bf16[2,16,8], index: 1, kind: input, shape index: {}]   ;;  %s853_s2 = inlined_call_operand.vmem [shape: bf16[16,32], index: 2, kind: input, shape index: {}]   ;;  %s854_s3 = inlined_call_operand.vmem [shape: f32[1,32], index: 3, kind: input, shape index: {}]   ;;  %s855_s4 = inlined_call_operand.hbm [shape: bf16[2,16,32], index: 4, kind: output, shape index: {}]  }
   0x1   :  { %11 = vsyncpa [#allocation3 + $0x1], 0  ;;  %s728_s15 = smov 0   ;;  %s730_s16 = smov 0  }
   0x2   :  { %s732_s17 = smov 0   ;;  %s734_s18 = smov 0  }
   0x3   :  { %s736_s1 = smov 0   ;;  %s738_s19 = smov 0  }
   0x4 LB: > { %s519_s20 = sadd.s32 4294967295, %s695_s19   ;;  %s520_s21 = sadd.s32 4294967294, %s695_s19   ;;  %s695_s19 = sphi %s738_s19, %s17_s19   ;;  %s691_s1 = sphi %s736_s1, %s862_s1   ;;  %s687_s18 = sphi %s734_s18, %s861_s18   ;;  %s683_s17 = sphi %s732_s17, %s860_s17   ;;  %s679_s16 = sphi %s730_s16, %s859_s16   ;;  %s675_s15 = sphi %s728_s15, %s858_s15  }
   0x5   : > { %s29_s22 = sadd.s32 1, %s691_s1  ;;  %s144_s23 = sadd.s32 1, %s683_s17 }
   0x6   : > { %p31_p0 = scmp.ge.s32.totalorder %s29_s22, 2  ;;  %p154_p1 = scmp.ne.s32.totalorder %s683_s17, %s679_s16 }
   0x7   : > { %p155_p2 = scmp.eq.s32.totalorder %s519_s20, 1  ;;  %p160_p3 = scmp.ne.s32.totalorder %s679_s16, %s675_s15 }
   0x8   : > { %s864_s22 = smov (%p31_p0, %s29_s22), 0  ;;  %p161_p5 = scmp.eq.s32.totalorder %s520_s21, 1 }
   0x9   : > { %p768_p4 = por %p155_p2, %p154_p1  ;;  %s139_s25 = ssub.s32 %s691_s1, %s864_s22 }
   0xa   : > { %p523_p6 = scmp.ge.s32.totalorder %s695_s19, 1  ;;  %p142_p7 = scmp.eq.s32.totalorder %s139_s25, 0 }
   0xb   : > { %p775_p8 = por %p161_p5, %p160_p3  ;;  %p217_p9 = scmp.lt.s32.totalorder %s695_s19, 3 }
   0xc   : > { %s781_s27 = scalar_select %p142_p7, %s683_s17, %s144_s23  }
   0xd   : > { %p218_p10 = pnand %p523_p6, %p217_p9 }
   0xe   : > { %p260_p11 = scmp.lt.s32.totalorder (!%p218_p10), %s687_s18, 1  ;;  %vm301_vm0 = vcmask (!%p218_p10), 1043456   ;;  %v616_v0 = vld [vmem:[%s853_s2] sm:$0xff] (!%p218_p10)   ;;  %v697_v2 = vmov (!%p218_p10), 0.0   ;;  %vm698_vm1 = vmmov (!%p218_p10), 0   ;;  %s699_s9 = smov (!%p218_p10), 8  }
   0xf   : > { %221 = sbr.rel (%p218_p10) target bundleno = 390 (0x186), region = 36  ;;  %548 = vmatprep.subr.bf16.mxu0 (!%p218_p10), %v697_v2  ;;  %550 = vmatprep.mubr.msk.bf16.mxu0 (!%p218_p10), %vm698_vm1, %v697_v2  ;;  %vm305_vm2 = vsmask.f32 (!%p218_p10), 256  ;;  %vm324_vm3 = vcmask (!%p218_p10), 64512   ;;  %vm350_vm4 = vcmask (!%p218_p10), 130048   ;;  %s256_s10 = sand.u32 (!%p218_p10), 1, %s679_s16  }
  0x10   : > { %549 = vmatpush3.bf16.msra.mxu0 (!%p218_p10), %v616_v0  ;;  %s524_s11 = sshll.u32 (!%p218_p10), %s256_s10, 3  ;;  %v531_v21 = vld [vmem:[%s854_s3] ss:$0 sm:$0xff] (!%p218_p10)  ;;  %s545_s21 = sshll.u32 (!%p218_p10), %s687_s18, 7  ;;  %vm403_vm5 = vcmask (!%p218_p10), 257024  }
  0x11   : > { %s258_s14 = scalar_lea.vmem (!%p218_p10), [#allocation2], %s524_s11  ;;  %s700_s30 = smov (!%p218_p10), [#allocation2]  }
  0x12   : > { %s422_s20 = sshll.u32 (!%p218_p10), %s258_s14, 4  ;;  %s621_s5 = sshll.u32 (!%p218_p10), %s700_s30, 4  ;;  %s798_s20 = int_to_ptr.vmem [resolvable:$true] %s422_s20  ;;  %s622_s5 = int_to_ptr.vmem [resolvable:$false] %s621_s5 }
  0x13   : > { %p624_p1 = scmp.lt.s32.totalorder (!%p218_p10), %s798_s20, %s622_s5 }
  0x16   : > { %s261_s28 = scalar_select %p260_p11, %s687_s18, 1 }
  0x17   : > { %s617_s18 = scalar_lea.vmem %s798_s20, 128 }
  0x18   : > { %s541_s29 = sshll.u32 %s261_s28, 3  ;;  %s803_s28 = scalar_lea.hbm %s855_s4, %s545_s21 }
  0x19   : > { %s267_s6 = scalar_lea.vmem %s851_s0, %s541_s29  ;;  %s805_s29 = scalar_lea.sflag [#allocation3], %s256_s10 }
  0x1a   : > { %v614_v1 = vld [vmem:[%s267_s6] ss:$0 sps:$4 sm:$0xff]   ;;  %v615_v3 = vld [vmem:[%s267_s6 + $0x4] ss:$0 sps:$4 sm:$0xff]   ;;  %p618_p12 = scmp.ne.s32.totalorder %s798_s20, %s617_s18  ;;  %s623_s6 = scalar_lea.vmem %s622_s5, 256 }
  0x1b   : > { %v304_v4 = vsel %vm301_vm0, 0, %v614_v1  ;;  %v313_v7 = vshrl.u32 %v615_v3, 16  ;;  %v316_v8 = vshll.u32 %v615_v3, 16  ;;  %p625_p2 = scmp.lt.s32.totalorder %s623_s6, %s617_s18 }
  0x1c   : > { %v306_v5 = vshrl.u32 %v304_v4, 16  ;;  %v309_v6 = vshll.u32 %v304_v4, 16  ;;  %p619_p13 = pnand %p618_p12, %p768_p4 }
  0x1d   : > { %v315_v10 = vrot.slane %v313_v7, 7  ;;  %p626_p3 = por %p625_p2, %p624_p1 }
  0x1e   : > { %v308_v9 = vrot.slane %v306_v5, 7  ;;  %p620_p0 = pneg %p619_p13 }
  0x1f   : > { %v318_v12 = vor.u32 %v316_v8, %v315_v10 }
  0x20   : > { %v311_v11 = vor.u32 %v309_v6, %v308_v9  ;;  %p627_p5 = pnand %p626_p3, %p620_p0 }
  0x21   : > { %v319_v13 = vsel %vm305_vm2, %v308_v9, %v318_v12 }
  0x22   : > { %320 = vrot.lane.b32.xlu0 %v311_v11, %s699_s9 }
  0x26   : > { %322 = vrot.lane.b32.xlu0 %v319_v13, %s699_s9 }
  0x94   : > { %v321_v14 = vpop.permute.xlu0 %320 }
  0x95   : > { %v326_v15 = vsel %vm324_vm3, %v304_v4, %v321_v14 }
  0x96   : > { %v341_v18 = vrot.slane %v326_v15, 4 }
  0x98   : > { %v323_v16 = vpop.permute.xlu0 %322 }
  0x99   : > { %v328_v17 = vsel %vm324_vm3, %v615_v3, %v323_v16 }
  0x9a   : > { %v342_v19 = vrot.slane %v328_v17, 4 }
  0x9c   : > { %v343_v20 = vsel %vm301_vm0, %v341_v18, %v342_v19 }
  0x9d   : > { %551 = vmatmul.mubr.msk.bf16.vlgmr.msra.gmra.mrb[0].mxu0 %vm350_vm4, %v343_v20 }
 0x170   : > { %v388_v22 = vpop.f32.mrb[0].mxu0 }
 0x171   : > { %v389_v23 = vadd.f32 %v531_v21, %v388_v22  ;;  %v552_v24 = vpop.f32.mrb[1].mxu0 }
 0x172   : > { %v391_v25 = vpop.f32.mrb[2].mxu0 }
 0x173   : > { %v543_v26 = vpack.c.bf16 %v389_v23, %v389_v23  ;;  %v392_v27 = vadd.f32 %v531_v21, %v391_v25  ;;  %v553_v28 = vpop.f32.mrb[3].mxu0 }
 0x175   : > { %404 = vst.msk [vmem:[%s258_s14] sm:$0xf] %vm403_vm5, %v543_v26  ;;  %v544_v29 = vpack.c.bf16 %v392_v27, %v392_v27 }
 0x177   : > { %405 = vst.msk [vmem:[%s258_s14 + $0x4] sm:$0xf] %vm403_vm5, %v544_v29 }
 0x178   : > { %630 = shalt.err (!%p627_p5)
}
 0x179   : > { %s631_s7 = scalar_lea.hbm %s803_s28, 128  ;;  %s635_s10 = scalar_lea.hbm %s855_s4, 256 }
 0x17a   : > { %p632_p6 = scmp.ne.s32.totalorder %s803_s28, %s631_s7  ;;  %p636_p10 = scmp.lt.u32.totalorder %s803_s28, %s855_s4 }
 0x17b   : > { %p637_p11 = scmp.lt.u32.totalorder %s635_s10, %s631_s7  ;;  %p639_p13 = scmp.lt.u32.totalorder %s631_s7, %s803_s28 }
 0x17c   : > { %p633_p7 = pnand %p632_p6, %p768_p4 }
 0x17d   : > { %p638_p12 = por %p637_p11, %p636_p10 }
 0x17e   : > { %p634_p9 = pneg %p633_p7 }
 0x17f   : > { %p640_p0 = por %p639_p13, %p638_p12 }
 0x181   : > { %p641_p1 = pnand %p640_p0, %p634_p9 }
 0x183   : > { %644 = shalt.err (!%p641_p1)
}
 0x184   : > { %s701_s13 = smov 64   ;;  %s702_s14 = smov 4  }
 0x185   : > { %554 = dma.vmem_to_hbm [thread:$0]  (%p768_p4), %s798_s20, 128, %s803_s28, %s805_s29, %s701_s13, %s701_s13, %s702_s14  }
 0x186 PF: > { %p560_p2 = scmp.ge.s32.totalorder %s695_s19, 2  ;;  %s437_s21 = sand.u32 1, %s675_s15  }
 0x187   : > { %s438_s23 = scalar_lea.sflag [#allocation3], %s437_s21 }
 0x188   : > { %p557_p3 = pnand %p560_p2, %p775_p8 }
 0x18a   : > { %670 = dma.done.wait (!%p557_p3), %s438_s23, 128  }
 0x18b   : > { %672 = vsyncadd (!%p557_p3), %s438_s23, 4294967168  ;;  %s17_s19 = sadd.s32 1, %s695_s19   ;;  %s858_s15 = smov %s679_s16 }
 0x18c   : > { %p14_p5 = scmp.ge.s32.totalorder %s17_s19, 4   ;;  %s859_s16 = smov %s683_s17 }
 0x18d   : > { %s860_s17 = smov %s781_s27  ;;  %s861_s18 = smov %s691_s1 }
 0x18e   : > { %s862_s1 = smov %s864_s22  ;;  %16 = sbr.rel (!%p14_p5) target bundleno = 4 (0x4), region = 74 }
 0x195   :  { %443 = vsyncpa [#allocation3], 1 }
 0x196   :  { %445 = vsyncpa [#allocation3 + $0x1], 1 }

</bundles_post_ra>
